<compile_context>
chip_gen: v5e
topology: v5e:2x2
jax: 0.10.0
libtpu: 0.0.40
codegen_flags: <defaults>
</compile_context>

<pallas_src>
import functools

import jax
import jax.numpy as jnp
from jax.experimental import pallas as pl
from jax.experimental.pallas import tpu as pltpu


def _round_up(n, m):
    return ((n + m - 1) // m) * m


def _attn_net_kernel(x_ref, w1_ref, b1_ref, w2_ref, b2_ref, a_ref, *,
                     cast_to_bf16):
    # --- First Linear + Tanh -------------------------------------------------
    x = x_ref[...]
    w1 = w1_ref[...]
    if cast_to_bf16 and x.dtype == jnp.float32:
        # In-VMEM VPU cast, hidden under the x DMA; MXU gets bf16, f32 accum.
        x = x.astype(jnp.bfloat16)
        w1 = w1.astype(jnp.bfloat16)
    h = jnp.dot(x, w1, preferred_element_type=jnp.float32)        # (tile_m, D) f32
    h = jnp.tanh(h + b1_ref[...].astype(jnp.float32))

    # --- Second Linear (tiny D x C_pad) --------------------------------------
    w2 = w2_ref[...]
    if cast_to_bf16 and w2.dtype == jnp.float32:
        w2 = w2.astype(jnp.bfloat16)
    a = jnp.dot(h.astype(w2.dtype), w2, preferred_element_type=jnp.float32)
    a = a + b2_ref[...].astype(jnp.float32)
    a_ref[...] = a.astype(a_ref.dtype)                            # unmasked lane-dense vst


def attn_net_forward(x, w1, b1, w2, b2, *, tile_m=1024,
                     out_dtype=jnp.float32, cast_to_bf16=False,
                     return_padded=False, vmem_limit_bytes=None):
    """Pallas implementation of Attn_Net.forward (eval mode, dropout=False).

    Args:
      x : (N, L) array (f32 or bf16)
      w1: (L, D), b1: (D,)   -- first Linear, transposed vs torch weight
      w2: (D, C), b2: (C,)   -- second Linear, transposed vs torch weight
      tile_m: row tile.  Guidance: ~512-1024 on v5e/v7x, 2048-4096 on v6e
        (128 MiB VMEM).  On v7x prefer a value giving an even, >=4-step grid
        so both TensorCores stay balanced.
      out_dtype: dtype of the attention logits A (f32 by default).
      cast_to_bf16: cast f32 operands to bf16 for the MXU (f32 accumulation);
        big win on v5e, validate accuracy tolerance.
      return_padded: if True, return A lane-padded to 128 columns so the
        consumer can fuse the column slice (saves one HBM pass).
    Returns:
      (A, x) with A of shape (N, C) (or (N, 128) if return_padded).
    """
    N, L = x.shape
    L_w, D = w1.shape
    assert L_w == L, "w1 must be (L, D) (transpose of torch weight)"
    C = w2.shape[1]

    # Lane-dense output: pad the class dim up to a full 128-lane vreg width.
    C_pad = _round_up(max(C, 128), 128)

    # Row tiling: sublane-aligned (16 rows/vreg for 16-bit dtypes, else 8),
    # clamped to the problem size.  No padding of x: the grid is ragged and
    # Pallas masks the overhang writes.
    sub = 16 if jnp.dtype(x.dtype).itemsize == 2 else 8
    tile_m = max(sub, min(int(tile_m), _round_up(N, sub)))
    tile_m = _round_up(tile_m, sub)
    grid_m = pl.cdiv(N, tile_m)

    # Small, one-time weight-side padding / reshapes (not on the x path).
    w2_p = jnp.pad(w2, ((0, 0), (0, C_pad - C))) if C_pad != C else w2
    b1_2d = b1.reshape(1, D)
    b2_2d = (jnp.pad(b2, (0, C_pad - C)) if C_pad != C else b2).reshape(1, C_pad)

    x_item = jnp.dtype(x.dtype).itemsize
    w1_item = jnp.dtype(w1.dtype).itemsize
    w2_item = jnp.dtype(w2_p.dtype).itemsize
    o_item = jnp.dtype(out_dtype).itemsize

    # Right-size the VMEM request from the real footprint (cap ~75% capacity).
    if vmem_limit_bytes is None:
        footprint = (
            2 * tile_m * L * x_item                            # x tile (2-buf)
            + 2 * tile_m * C_pad * o_item                      # out tile (2-buf)
            + 2 * (L * D * w1_item + D * C_pad * w2_item)      # weights (worst case)
            + 2 * (8 * D * w1_item + 8 * C_pad * w2_item)      # biases (sublane pad)
            + tile_m * D * (4 + 2)                             # f32 h + bf16 copy
            + tile_m * L * 2                                   # optional bf16 x copy
            + tile_m * C_pad * 4                               # f32 pre-store acc
        )
        try:
            vmem_cap = int(pltpu.get_tpu_info().vmem_capacity_bytes)
        except Exception:
            vmem_cap = 64 * 1024 * 1024                        # v7x-safe assumption
        vmem_limit_bytes = int(footprint * 1.5) + (4 << 20)
        vmem_limit_bytes = max(vmem_limit_bytes, 16 << 20)
        vmem_limit_bytes = min(vmem_limit_bytes, (vmem_cap * 3) // 4)

    cost = pl.CostEstimate(
        flops=2 * N * L * D + 2 * N * D * C_pad,
        transcendentals=N * D,
        bytes_accessed=(N * L * x_item
                        + L * D * w1_item
                        + D * C_pad * w2_item
                        + N * C_pad * o_item),
    )

    kernel = functools.partial(_attn_net_kernel, cast_to_bf16=bool(cast_to_bf16))

    def _build(resident_mode):
        # Resident operands: constant index maps; single-buffered when the
        # Pallas version supports pipeline_mode on a top-level pallas_call.
        kw = {} if resident_mode is None else {"pipeline_mode": resident_mode}
        return pl.pallas_call(
            kernel,
            out_shape=jax.ShapeDtypeStruct((N, C_pad), out_dtype),
            grid_spec=pltpu.PrefetchScalarGridSpec(
                num_scalar_prefetch=0,
                grid=(grid_m,),
                in_specs=[
                    pl.BlockSpec((tile_m, L), lambda i: (i, 0)),          # x (streamed)
                    pl.BlockSpec((L, D), lambda i: (0, 0), **kw),         # W1
                    pl.BlockSpec((1, D), lambda i: (0, 0), **kw),         # b1
                    pl.BlockSpec((D, C_pad), lambda i: (0, 0), **kw),     # W2 (lane-padded)
                    pl.BlockSpec((1, C_pad), lambda i: (0, 0), **kw),     # b2
                ],
                out_specs=pl.BlockSpec((tile_m, C_pad), lambda i: (i, 0)),
            ),
            compiler_params=pltpu.CompilerParams(
                dimension_semantics=("parallel",),   # shard row-tiles across TCs
                vmem_limit_bytes=int(vmem_limit_bytes),
            ),
            cost_estimate=cost,
        )

    try:
        a_pad = _build(pl.Buffered(1))(x, w1, b1_2d, w2_p, b2_2d)
    except Exception:
        # Fallback: default double-buffering of the (small) resident weights.
        a_pad = _build(None)(x, w1, b1_2d, w2_p, b2_2d)

    if return_padded:
        return a_pad, x
    a = a_pad[:, :C] if C_pad != C else a_pad
    # The module returns the attention logits AND the untouched input.
    return a, x


def _ref_forward(x, w1, b1, w2, b2):
    h = jnp.tanh(x.astype(jnp.float32) @ w1 + b1)
    return h @ w2 + b2


if __name__ == "__main__":
    # Small shapes consistent with Attn_Net(L, D, n_classes); N chosen so the
    # tiled + ragged-last-block path is exercised (tile_m=16 -> grid=(3,),
    # last block covers only 8 valid rows).
    N, L, D, C = 40, 64, 32, 1

    key = jax.random.PRNGKey(0)
    kx, kw1, kb1, kw2, kb2 = jax.random.split(key, 5)

    x = jax.random.normal(kx, (N, L), dtype=jnp.float32)
    w1 = jax.random.normal(kw1, (L, D), dtype=jnp.float32) * 0.05
    b1 = jax.random.normal(kb1, (D,), dtype=jnp.float32) * 0.05
    w2 = jax.random.normal(kw2, (D, C), dtype=jnp.float32) * 0.05
    b2 = jax.random.normal(kb2, (C,), dtype=jnp.float32) * 0.05

    a_out, x_out = attn_net_forward(x, w1, b1, w2, b2, tile_m=16)
    jax.block_until_ready(a_out)
    jax.block_until_ready(x_out)

    # Correctness check against a pure-JAX reference (tolerance accounts for
    # TPU default matmul precision differences between XLA and Mosaic).
    a_ref = _ref_forward(x, w1, b1, w2, b2)
    assert a_out.shape == (N, C), a_out.shape
    assert x_out.shape == (N, L), x_out.shape
    max_err = float(jnp.max(jnp.abs(a_out.astype(jnp.float32) - a_ref)))
    assert max_err < 1e-3, f"max abs err {max_err}"
    assert jnp.array_equal(x_out, x)

    print("KERNEL_OK")
</pallas_src>

<mosaic_0001>
module attributes {stable_mosaic.version = 11 : i64} {
  func.func @_attn_net_kernel(%arg0: i32, %arg1: memref<16x64xf32, #tpu.memory_space<vmem>>, %arg2: memref<64x32xf32, #tpu.memory_space<vmem>>, %arg3: memref<1x32xf32, #tpu.memory_space<vmem>>, %arg4: memref<32x128xf32, #tpu.memory_space<vmem>>, %arg5: memref<1x128xf32, #tpu.memory_space<vmem>>, %arg6: memref<16x128xf32, #tpu.memory_space<vmem>>) attributes {dimension_semantics = [#tpu.dimension_semantics<parallel>], iteration_bounds = array<i64: 3>, scalar_prefetch = 0 : i64, scratch_operands = 0 : i64, tpu.core_type = #tpu.core_type<tc>, window_params = [{transform_indices = @transform_0, window_bounds = array<i64: 16, 64>}, {pipeline_mode = #tpu.pipeline_mode<synchronous>, transform_indices = @transform_1, window_bounds = array<i64: 64, 32>}, {pipeline_mode = #tpu.pipeline_mode<synchronous>, transform_indices = @transform_2, window_bounds = array<i64: 1, 32>}, {pipeline_mode = #tpu.pipeline_mode<synchronous>, transform_indices = @transform_3, window_bounds = array<i64: 32, 128>}, {pipeline_mode = #tpu.pipeline_mode<synchronous>, transform_indices = @transform_4, window_bounds = array<i64: 1, 128>}, {transform_indices = @transform_5, window_bounds = array<i64: 16, 128>}]} {
    %c0 = arith.constant 0 : index
    %c0_0 = arith.constant 0 : index
    %0 = vector.load %arg1[%c0, %c0_0] : memref<16x64xf32, #tpu.memory_space<vmem>>, vector<16x64xf32>
    %c0_1 = arith.constant 0 : index
    %c0_2 = arith.constant 0 : index
    %1 = vector.load %arg2[%c0_1, %c0_2] : memref<64x32xf32, #tpu.memory_space<vmem>>, vector<64x32xf32>
    %cst = arith.constant dense<0.000000e+00> : vector<16x32xf32>
    %2 = tpu.matmul %0, %1, %cst {dimension_numbers = #tpu.dot_dimension_numbers<[1], [0], [0], [1], [0, 0, 1, 1], [], []>} : vector<16x64xf32>, vector<64x32xf32>, vector<16x32xf32> -> vector<16x32xf32>
    %c0_3 = arith.constant 0 : index
    %c0_4 = arith.constant 0 : index
    %3 = vector.load %arg3[%c0_3, %c0_4] : memref<1x32xf32, #tpu.memory_space<vmem>>, vector<1x32xf32>
    %4 = vector.broadcast %3 : vector<1x32xf32> to vector<16x32xf32>
    %5 = arith.addf %2, %4 : vector<16x32xf32>
    %6 = math.tanh %5 : vector<16x32xf32>
    %c0_5 = arith.constant 0 : index
    %c0_6 = arith.constant 0 : index
    %7 = vector.load %arg4[%c0_5, %c0_6] : memref<32x128xf32, #tpu.memory_space<vmem>>, vector<32x128xf32>
    %cst_7 = arith.constant dense<0.000000e+00> : vector<16x128xf32>
    %8 = tpu.matmul %6, %7, %cst_7 {dimension_numbers = #tpu.dot_dimension_numbers<[1], [0], [0], [1], [0, 0, 1, 1], [], []>} : vector<16x32xf32>, vector<32x128xf32>, vector<16x128xf32> -> vector<16x128xf32>
    %c0_8 = arith.constant 0 : index
    %c0_9 = arith.constant 0 : index
    %9 = vector.load %arg5[%c0_8, %c0_9] : memref<1x128xf32, #tpu.memory_space<vmem>>, vector<1x128xf32>
    %10 = vector.broadcast %9 : vector<1x128xf32> to vector<16x128xf32>
    %11 = arith.addf %8, %10 : vector<16x128xf32>
    %c0_10 = arith.constant 0 : index
    %c0_11 = arith.constant 0 : index
    %12 = vector.load %arg6[%c0_10, %c0_11] : memref<16x128xf32, #tpu.memory_space<vmem>>, vector<16x128xf32>
    tpu.vector_store %arg6[%c0_10, %c0_11], %11 {strides = array<i32>} : memref<16x128xf32, #tpu.memory_space<vmem>>, vector<16x128xf32>,
    return
  }
  func.func @transform_0(%arg0: i32) -> (i32, i32) {
    %c0_i32 = arith.constant 0 : i32
    %c0_i32_0 = arith.constant 0 : i32
    return %arg0, %c0_i32 : i32, i32
  }
  func.func @transform_1(%arg0: i32) -> (i32, i32) {
    %c0_i32 = arith.constant 0 : i32
    %c0_i32_0 = arith.constant 0 : i32
    %c0_i32_1 = arith.constant 0 : i32
    return %c0_i32, %c0_i32_0 : i32, i32
  }
  func.func @transform_2(%arg0: i32) -> (i32, i32) {
    %c0_i32 = arith.constant 0 : i32
    %c0_i32_0 = arith.constant 0 : i32
    %c0_i32_1 = arith.constant 0 : i32
    return %c0_i32, %c0_i32_0 : i32, i32
  }
  func.func @transform_3(%arg0: i32) -> (i32, i32) {
    %c0_i32 = arith.constant 0 : i32
    %c0_i32_0 = arith.constant 0 : i32
    %c0_i32_1 = arith.constant 0 : i32
    return %c0_i32, %c0_i32_0 : i32, i32
  }
  func.func @transform_4(%arg0: i32) -> (i32, i32) {
    %c0_i32 = arith.constant 0 : i32
    %c0_i32_0 = arith.constant 0 : i32
    %c0_i32_1 = arith.constant 0 : i32
    return %c0_i32, %c0_i32_0 : i32, i32
  }
  func.func @transform_5(%arg0: i32) -> (i32, i32) {
    %c0_i32 = arith.constant 0 : i32
    %c0_i32_0 = arith.constant 0 : i32
    return %arg0, %c0_i32 : i32, i32
  }
}

module attributes {stable_mosaic.version = 11 : i64} {
  func.func @_attn_net_kernel(%arg0: i32, %arg1: memref<16x64xf32, #tpu.memory_space<vmem>>, %arg2: memref<64x32xf32, #tpu.memory_space<vmem>>, %arg3: memref<1x32xf32, #tpu.memory_space<vmem>>, %arg4: memref<32x128xf32, #tpu.memory_space<vmem>>, %arg5: memref<1x128xf32, #tpu.memory_space<vmem>>, %arg6: memref<16x128xf32, #tpu.memory_space<vmem>>) attributes {dimension_semantics = [#tpu.dimension_semantics<parallel>], iteration_bounds = array<i64: 3>, scalar_prefetch = 0 : i64, scratch_operands = 0 : i64, tpu.core_type = #tpu.core_type<tc>, window_params = [{transform_indices = @transform_0, window_bounds = array<i64: 16, 64>}, {pipeline_mode = #tpu.pipeline_mode<synchronous>, transform_indices = @transform_1, window_bounds = array<i64: 64, 32>}, {pipeline_mode = #tpu.pipeline_mode<synchronous>, transform_indices = @transform_2, window_bounds = array<i64: 1, 32>}, {pipeline_mode = #tpu.pipeline_mode<synchronous>, transform_indices = @transform_3, window_bounds = array<i64: 32, 128>}, {pipeline_mode = #tpu.pipeline_mode<synchronous>, transform_indices = @transform_4, window_bounds = array<i64: 1, 128>}, {transform_indices = @transform_5, window_bounds = array<i64: 16, 128>}]} {
    %c0 = arith.constant 0 : index
    %c0_0 = arith.constant 0 : index
    %0 = vector.load %arg1[%c0, %c0_0] : memref<16x64xf32, #tpu.memory_space<vmem>>, vector<16x64xf32>
    %c0_1 = arith.constant 0 : index
    %c0_2 = arith.constant 0 : index
    %1 = vector.load %arg2[%c0_1, %c0_2] : memref<64x32xf32, #tpu.memory_space<vmem>>, vector<64x32xf32>
    %cst = arith.constant dense<0.000000e+00> : vector<16x32xf32>
    %2 = tpu.matmul %0, %1, %cst {dimension_numbers = #tpu.dot_dimension_numbers<[1], [0], [0], [1], [0, 0, 1, 1], [], []>} : vector<16x64xf32>, vector<64x32xf32>, vector<16x32xf32> -> vector<16x32xf32>
    %c0_3 = arith.constant 0 : index
    %c0_4 = arith.constant 0 : index
    %3 = vector.load %arg3[%c0_3, %c0_4] : memref<1x32xf32, #tpu.memory_space<vmem>>, vector<1x32xf32>
    %4 = vector.broadcast %3 : vector<1x32xf32> to vector<16x32xf32>
    %5 = arith.addf %2, %4 : vector<16x32xf32>
    %6 = math.tanh %5 : vector<16x32xf32>
    %c0_5 = arith.constant 0 : index
    %c0_6 = arith.constant 0 : index
    %7 = vector.load %arg4[%c0_5, %c0_6] : memref<32x128xf32, #tpu.memory_space<vmem>>, vector<32x128xf32>
    %cst_7 = arith.constant dense<0.000000e+00> : vector<16x128xf32>
    %8 = tpu.matmul %6, %7, %cst_7 {dimension_numbers = #tpu.dot_dimension_numbers<[1], [0], [0], [1], [0, 0, 1, 1], [], []>} : vector<16x32xf32>, vector<32x128xf32>, vector<16x128xf32> -> vector<16x128xf32>
    %c0_8 = arith.constant 0 : index
    %c0_9 = arith.constant 0 : index
    %9 = vector.load %arg5[%c0_8, %c0_9] : memref<1x128xf32, #tpu.memory_space<vmem>>, vector<1x128xf32>
    %10 = vector.broadcast %9 : vector<1x128xf32> to vector<16x128xf32>
    %11 = arith.addf %8, %10 : vector<16x128xf32>
    %c0_10 = arith.constant 0 : index
    %c0_11 = arith.constant 0 : index
    %12 = vector.load %arg6[%c0_10, %c0_11] : memref<16x128xf32, #tpu.memory_space<vmem>>, vector<16x128xf32>
    tpu.vector_store %arg6[%c0_10, %c0_11], %11 {strides = array<i32>} : memref<16x128xf32, #tpu.memory_space<vmem>>, vector<16x128xf32>,
    return
  }
  func.func @transform_0(%arg0: i32) -> (i32, i32) {
    %c0_i32 = arith.constant 0 : i32
    %c0_i32_0 = arith.constant 0 : i32
    return %arg0, %c0_i32 : i32, i32
  }
  func.func @transform_1(%arg0: i32) -> (i32, i32) {
    %c0_i32 = arith.constant 0 : i32
    %c0_i32_0 = arith.constant 0 : i32
    %c0_i32_1 = arith.constant 0 : i32
    return %c0_i32, %c0_i32_0 : i32, i32
  }
  func.func @transform_2(%arg0: i32) -> (i32, i32) {
    %c0_i32 = arith.constant 0 : i32
    %c0_i32_0 = arith.constant 0 : i32
    %c0_i32_1 = arith.constant 0 : i32
    return %c0_i32, %c0_i32_0 : i32, i32
  }
  func.func @transform_3(%arg0: i32) -> (i32, i32) {
    %c0_i32 = arith.constant 0 : i32
    %c0_i32_0 = arith.constant 0 : i32
    %c0_i32_1 = arith.constant 0 : i32
    return %c0_i32, %c0_i32_0 : i32, i32
  }
  func.func @transform_4(%arg0: i32) -> (i32, i32) {
    %c0_i32 = arith.constant 0 : i32
    %c0_i32_0 = arith.constant 0 : i32
    %c0_i32_1 = arith.constant 0 : i32
    return %c0_i32, %c0_i32_0 : i32, i32
  }
  func.func @transform_5(%arg0: i32) -> (i32, i32) {
    %c0_i32 = arith.constant 0 : i32
    %c0_i32_0 = arith.constant 0 : i32
    return %arg0, %c0_i32 : i32, i32
  }
}

</mosaic_0001>

<bundles_post_ra>
// kernel: tpu_custom_call.1
= control target key start
LH: loop header
LB: loop body
LE: loop exit
PB: predicated region body
PF: predicated region fallthrough
CT: control target
= control target key end

     0   :  { %10 = vsyncpa [#allocation3], 0  ;;  %s763_s0 = inlined_call_operand.vmem [shape: f32[40,64], index: 0, kind: input, shape index: {}]   ;;  %s764_s1 = inlined_call_operand.vmem [shape: f32[64,32], index: 1, kind: input, shape index: {}]   ;;  %s765_s2 = inlined_call_operand.vmem [shape: f32[1,32], index: 2, kind: input, shape index: {}]   ;;  %s766_s3 = inlined_call_operand.vmem [shape: f32[32,128], index: 3, kind: input, shape index: {}]   ;;  %s767_s4 = inlined_call_operand.vmem [shape: f32[1,128], index: 4, kind: input, shape index: {}]   ;;  %s768_s5 = inlined_call_operand.hbm [shape: f32[40,128], index: 5, kind: output, shape index: {}]  }
   0x1   :  { %12 = vsyncpa [#allocation3 + $0x1], 0  ;;  %s604_s18 = smov 0   ;;  %s606_s19 = smov 0  }
   0x2   :  { %s608_s20 = smov 0   ;;  %s610_s21 = smov 0  }
   0x3 LB: > { %s625_s22 = sadd.s32 4294967295, %s569_s21   ;;  %s421_s23 = sadd.s32 4294967294, %s569_s21   ;;  %s569_s21 = sphi %s610_s21, %s775_s21   ;;  %s565_s20 = sphi %s608_s20, %s774_s20   ;;  %s561_s19 = sphi %s606_s19, %s773_s19   ;;  %s557_s18 = sphi %s604_s18, %s772_s18  }
   0x4   : > { %s629_s24 = sadd.s32 1, %s569_s21   ;;  %s135_s25 = sadd.s32 1, %s565_s20 }
   0x5   : > { %s132_s26 = ssub.s32 %s569_s21, %s629_s24  ;;  %p145_p0 = scmp.ne.s32.totalorder %s565_s20, %s561_s19 }
   0x6   : > { %p133_p1 = scmp.eq.s32.totalorder %s132_s26, 0  ;;  %p146_p2 = scmp.eq.s32.totalorder %s625_s22, 2 }
   0x7   : > { %p151_p3 = scmp.ne.s32.totalorder %s561_s19, %s557_s18  ;;  %p152_p4 = scmp.eq.s32.totalorder %s421_s23, 2 }
   0x8   : > { %s640_s27 = scalar_select %p133_p1, %s565_s20, %s135_s25  }
   0x9   : > { %p642_p5 = por %p146_p2, %p145_p0  ;;  %p646_p6 = por %p152_p4, %p151_p3 }
   0xa   : > { %p424_p7 = scmp.ge.s32.totalorder %s569_s21, 1  ;;  %p199_p8 = scmp.lt.s32.totalorder %s569_s21, 4 }
   0xc   : > { %p200_p9 = pnand %p424_p7, %p199_p8 }
   0xd   : > { %s659_s9 = sshll.u32 (!%p200_p9), %s625_s22, 1  ;;  %s228_s6 = sand.u32 (!%p200_p9), 1, %s561_s19  }
   0xe   : > { %203 = sbr.rel (%p200_p9) target bundleno = 338 (0x152), region = 40  ;;  %p236_p10 = scmp.lt.s32.totalorder (!%p200_p9), %s659_s9, 4 }
   0xf   : > { %s425_s7 = sshll.u32 (!%p200_p9), %s228_s6, 4 }
  0x10   : > { %s230_s11 = scalar_lea.vmem (!%p200_p9), [#allocation2], %s425_s7 }
  0x13   : > { %v259_v0 = vld [vmem:[%s764_s1 + $0x38] sm:$0xff]  ;;  %v258_v1 = vld [vmem:[%s764_s1 + $0x30] sm:$0xff]  ;;  %v257_v2 = vld [vmem:[%s764_s1 + $0x28] sm:$0xff]  ;;  %s237_s12 = scalar_select %p236_p10, %s659_s9, 4  ;;  %vm264_vm0 = vcmask 523264   ;;  %vm304_vm1 = vcmask 261120  }
  0x14   : > { %279 = vmatpush.msra.mxu0 %v259_v0  ;;  %442 = vmatpush.msra.mxu2 %v259_v0  ;;  %v256_v3 = vld [vmem:[%s764_s1 + $0x20] sm:$0xff]  ;;  %v255_v4 = vld [vmem:[%s764_s1 + $0x18] sm:$0xff]  ;;  %v254_v5 = vld [vmem:[%s764_s1 + $0x10] sm:$0xff]  ;;  %s345_s13 = ssub.s32 (%p642_p5), 5, %s659_s9 }
  0x15   : > { %s427_s17 = sshll.u32 %s237_s12, 3  ;;  %v253_v6 = vld [vmem:[%s764_s1 + $0x8] sm:$0xff]  ;;  %v252_v7 = vld [vmem:[%s764_s1] sm:$0xff]  ;;  %v299_v10 = vld [vmem:[%s766_s3 + $0x18] sm:$0xff]  ;;  %s703_s12 = scalar_lea.sflag [#allocation3], %s228_s6 }
  0x16   : > { %280 = vmatpush.msra.mxu0 %v258_v1  ;;  %443 = vmatpush.msra.mxu2 %v258_v1  ;;  %s239_s8 = scalar_lea.vmem %s763_s0, %s427_s17  ;;  %v298_v11 = vld [vmem:[%s766_s3 + $0x10] sm:$0xff]  ;;  %v297_v12 = vld [vmem:[%s766_s3 + $0x8] sm:$0xff]  ;;  %v296_v13 = vld [vmem:[%s766_s3] sm:$0xff]  ;;  %p346_p11 = scmp.lt.s32.totalorder (%p642_p5), %s345_s13, 2 }
  0x17   : > { %v250_v8 = vld [vmem:[%s239_s8] sm:$0xff]  ;;  %v251_v9 = vld [vmem:[%s239_s8 + $0x8] sm:$0xff]  ;;  %323 = vmatpush.msra.mxu1 %v299_v10 }
  0x18   : > { %281 = vmatpush.msra.mxu0 %v257_v2  ;;  %444 = vmatpush.msra.mxu2 %v257_v2  ;;  %v490_v14 = vld [vmem:[%s765_s2] ss:$0 sm:$0xff] }
  0x19   : > { %324 = vmatpush.msra.mxu1 %v298_v11  ;;  %v491_v21 = vld [vmem:[%s767_s4] ss:$0 sm:$0xff] }
  0x1a   : > { %282 = vmatpush.msra.mxu0 %v256_v3  ;;  %445 = vmatpush.msra.mxu2 %v256_v3 }
  0x1b   : > { %325 = vmatpush.msra.mxu1 %v297_v12 }
  0x1c   : > { %283 = vmatpush.msra.mxu0 %v255_v4  ;;  %446 = vmatpush.msra.mxu2 %v255_v4 }
  0x1d   : > { %326 = vmatpush.msra.mxu1 %v296_v13 }
  0x1e   : > { %284 = vmatpush.msra.mxu0 %v254_v5  ;;  %447 = vmatpush.msra.mxu2 %v254_v5 }
  0x20   : > { %285 = vmatpush.msra.mxu0 %v253_v6  ;;  %448 = vmatpush.msra.mxu2 %v253_v6 }
  0x22   : > { %286 = vmatpush.msra.mxu0 %v252_v7  ;;  %449 = vmatpush.msra.mxu2 %v252_v7 }
  0x23   : > { %428 = vmatmul.msk.f32.vlgmr.msra.gmra.mxu0 %vm264_vm0, %v250_v8  ;;  %429 = vmatmul.msk.f32.vlgmr.msra.gmra.mxu2 %vm264_vm0, %v251_v9 }
  0xa0   : > { %v288_v15 = vpop.f32.mrf.mxu0 }
  0xa1   : > { %v289_v16 = vadd.f32 %v490_v14, %v288_v15 }
  0xa3   : > { %492 = vtanh.f32 %v289_v16 }
  0xa6   : > { %v291_v17 = vpop.f32.mrf.mxu2 }
  0xa7   : > { %v292_v18 = vadd.f32 %v490_v14, %v291_v17 }
  0xa9   : > { %v493_v19 = vpop.eup %492  ;;  %494 = vtanh.f32 %v292_v18 }
  0xaa   : > { %430 = vmatmul.msk.f32.vlgmr.msra.gmra.mxu1 %vm304_vm1, %v493_v19 }
  0xaf   : > { %v495_v20 = vpop.eup %494 }
  0xb2   : > { %431 = vmatmul.msk.f32.gmra.mxu1 %vm304_vm1, %v495_v20 }
 0x127   : > { %v328_v22 = vpop.f32.mrf.mxu1 }
 0x128   : > { %v329_v23 = vadd.f32 %v491_v21, %v328_v22 }
 0x12a   : > { %334 = vst [vmem:[%s230_s11] sm:$0xff] %v329_v23 }
 0x12e   : > { %343 = sbr.rel (!%p642_p5) target bundleno = 338 (0x152), region = 44 }
 0x12f   : > { %v331_v24 = vpop.f32.mrf.mxu1 }
 0x130   : > { %v332_v25 = vadd.f32 %v491_v21, %v331_v24 }
 0x132   : > { %335 = vst [vmem:[%s230_s11 + $0x8] sm:$0xff] %v332_v25 }
 0x133   : > { %s777_s13 = smov (!%p346_p11, %s345_s13), 2 }
 0x134   : > { %s434_s14 = sshll.u32 %s777_s13, 3 }
 0x135   : > { %s349_s15 = ssub.s32 16, %s434_s14 }
 0x136   : > { %s350_s16 = sshll.u32 %s349_s15, 4 }
 0x137   : > { %351 = vsyncadd %s703_s12, %s350_s16  ;;  %p712_p12 = scmp.ne.s32.totalorder %s434_s14, 0  ;;  %s441_s28 = sshll.u32 %s625_s22, 4 }
 0x138   : > { %s354_s9 = scalar_lea.hbm %s768_s5, %s441_s28  ;;  %s356_s26 = sshll.u32 %s230_s11, 4  ;;  %s720_s26 = int_to_ptr.vmem [resolvable:$true] %s356_s26 }
 0x139   : > { %s358_s30 = sshll.u32 %s354_s9, 4  ;;  %s438_s6 = sshll.u32 %s777_s13, 7  ;;  %s722_s30 = int_to_ptr.hbm [resolvable:$true] %s358_s30 }
 0x13a   : > { %s496_s7 = sshra.s32 %s720_s26, 4  ;;  %s498_s8 = sshrl.u32 %s438_s6, 4  ;;  %s497_s7 = int_to_ptr.vmem [resolvable:$true] %s496_s7 }
 0x13b   : > { %s503_s10 = scalar_lea.vmem %s497_s7, %s498_s8  ;;  %s571_s22 = smov [#allocation2]  }
 0x13c   : > { %p504_p13 = scmp.ne.s32.totalorder %s497_s7, %s503_s10  ;;  %s507_s14 = scalar_lea.vmem %s571_s22, 32 }
 0x13d   : > { %p509_p2 = scmp.lt.s32.totalorder %s507_s14, %s503_s10 }
 0x13e   : > { %p505_p0 = pnand %p504_p13, %p712_p12 }
 0x140   : > { %p506_p1 = pneg %p505_p0 }
 0x142   : > { %p511_p3 = pnand %p509_p2, %p506_p1 }
 0x144   : > { %514 = shalt.err (!%p511_p3)
}
 0x145   : > { %s515_s11 = sshra.s32 %s722_s30, 4  ;;  %s526_s23 = scalar_lea.hbm %s768_s5, 40  ;;  %s516_s11 = int_to_ptr.hbm [resolvable:$true] %s515_s11 }
 0x146   : > { %s522_s15 = scalar_lea.hbm %s516_s11, %s498_s8  ;;  %p527_p8 = scmp.lt.s32.totalorder %s516_s11, %s768_s5 }
 0x147   : > { %p523_p4 = scmp.ne.s32.totalorder %s516_s11, %s522_s15  ;;  %p528_p9 = scmp.lt.s32.totalorder %s526_s23, %s522_s15 }
 0x149   : > { %p524_p5 = pnand %p523_p4, %p712_p12  ;;  %p529_p10 = por %p528_p9, %p527_p8 }
 0x14b   : > { %p525_p7 = pneg %p524_p5 }
 0x14d   : > { %p530_p11 = pnand %p529_p10, %p525_p7 }
 0x14f   : > { %533 = shalt.err (!%p530_p11)
}
 0x150   : > { %s572_s7 = smov 128   ;;  %s573_s8 = smov 8  }
 0x151   : > { %364 = dma.vmem_to_hbm [thread:$0]  (%p712_p12), %s720_s26, %s438_s6, %s722_s30, %s703_s12, %s572_s7, %s572_s7, %s573_s8  }
 0x152 PF: > { %p455_p13 = scmp.ge.s32.totalorder %s569_s21, 2  ;;  %s373_s10 = sand.u32 1, %s557_s18  }
 0x153   : > { %s374_s22 = scalar_lea.sflag [#allocation3], %s373_s10 }
 0x154   : > { %p452_p0 = pnand %p455_p13, %p646_p6 }
 0x156   : > { %p453_p1 = pneg %p452_p0 }
 0x158   : > { %552 = dma.done.wait (%p453_p1), %s374_s22, 256  }
 0x159   : > { %554 = vsyncadd (%p453_p1), %s374_s22, 4294967040  ;;  %p15_p2 = scmp.ge.s32.totalorder %s629_s24, 5   ;;  %s772_s18 = smov %s561_s19 }
 0x15a   : > { %s773_s19 = smov %s565_s20  ;;  %s774_s20 = smov %s640_s27 }
 0x15b   : > { %s775_s21 = smov %s629_s24  ;;  %17 = sbr.rel (!%p15_p2) target bundleno = 3 (0x3), region = 75 }
 0x160   :  { %380 = vsyncpa [#allocation3], 1 }
 0x161   :  { %382 = vsyncpa [#allocation3 + $0x1], 1 }

// kernel: tpu_custom_call.1
= control target key start
LH: loop header
LB: loop body
LE: loop exit
PB: predicated region body
PF: predicated region fallthrough
CT: control target
= control target key end

     0   :  { %10 = vsyncpa [#allocation3], 0  ;;  %s763_s0 = inlined_call_operand.vmem [shape: f32[40,64], index: 0, kind: input, shape index: {}]   ;;  %s764_s1 = inlined_call_operand.vmem [shape: f32[64,32], index: 1, kind: input, shape index: {}]   ;;  %s765_s2 = inlined_call_operand.vmem [shape: f32[1,32], index: 2, kind: input, shape index: {}]   ;;  %s766_s3 = inlined_call_operand.vmem [shape: f32[32,128], index: 3, kind: input, shape index: {}]   ;;  %s767_s4 = inlined_call_operand.vmem [shape: f32[1,128], index: 4, kind: input, shape index: {}]   ;;  %s768_s5 = inlined_call_operand.hbm [shape: f32[40,128], index: 5, kind: output, shape index: {}]  }
   0x1   :  { %12 = vsyncpa [#allocation3 + $0x1], 0  ;;  %s604_s18 = smov 0   ;;  %s606_s19 = smov 0  }
   0x2   :  { %s608_s20 = smov 0   ;;  %s610_s21 = smov 0  }
   0x3 LB: > { %s625_s22 = sadd.s32 4294967295, %s569_s21   ;;  %s421_s23 = sadd.s32 4294967294, %s569_s21   ;;  %s569_s21 = sphi %s610_s21, %s775_s21   ;;  %s565_s20 = sphi %s608_s20, %s774_s20   ;;  %s561_s19 = sphi %s606_s19, %s773_s19   ;;  %s557_s18 = sphi %s604_s18, %s772_s18  }
   0x4   : > { %s629_s24 = sadd.s32 1, %s569_s21   ;;  %s135_s25 = sadd.s32 1, %s565_s20 }
   0x5   : > { %s132_s26 = ssub.s32 %s569_s21, %s629_s24  ;;  %p145_p0 = scmp.ne.s32.totalorder %s565_s20, %s561_s19 }
   0x6   : > { %p133_p1 = scmp.eq.s32.totalorder %s132_s26, 0  ;;  %p146_p2 = scmp.eq.s32.totalorder %s625_s22, 2 }
   0x7   : > { %p151_p3 = scmp.ne.s32.totalorder %s561_s19, %s557_s18  ;;  %p152_p4 = scmp.eq.s32.totalorder %s421_s23, 2 }
   0x8   : > { %s640_s27 = scalar_select %p133_p1, %s565_s20, %s135_s25  }
   0x9   : > { %p642_p5 = por %p146_p2, %p145_p0  ;;  %p646_p6 = por %p152_p4, %p151_p3 }
   0xa   : > { %p424_p7 = scmp.ge.s32.totalorder %s569_s21, 1  ;;  %p199_p8 = scmp.lt.s32.totalorder %s569_s21, 4 }
   0xc   : > { %p200_p9 = pnand %p424_p7, %p199_p8 }
   0xd   : > { %s659_s9 = sshll.u32 (!%p200_p9), %s625_s22, 1  ;;  %s228_s6 = sand.u32 (!%p200_p9), 1, %s561_s19  }
   0xe   : > { %203 = sbr.rel (%p200_p9) target bundleno = 338 (0x152), region = 40  ;;  %p236_p10 = scmp.lt.s32.totalorder (!%p200_p9), %s659_s9, 4 }
   0xf   : > { %s425_s7 = sshll.u32 (!%p200_p9), %s228_s6, 4 }
  0x10   : > { %s230_s11 = scalar_lea.vmem (!%p200_p9), [#allocation2], %s425_s7 }
  0x13   : > { %v259_v0 = vld [vmem:[%s764_s1 + $0x38] sm:$0xff]  ;;  %v258_v1 = vld [vmem:[%s764_s1 + $0x30] sm:$0xff]  ;;  %v257_v2 = vld [vmem:[%s764_s1 + $0x28] sm:$0xff]  ;;  %s237_s12 = scalar_select %p236_p10, %s659_s9, 4  ;;  %vm264_vm0 = vcmask 523264   ;;  %vm304_vm1 = vcmask 261120  }
  0x14   : > { %279 = vmatpush.msra.mxu0 %v259_v0  ;;  %442 = vmatpush.msra.mxu2 %v259_v0  ;;  %v256_v3 = vld [vmem:[%s764_s1 + $0x20] sm:$0xff]  ;;  %v255_v4 = vld [vmem:[%s764_s1 + $0x18] sm:$0xff]  ;;  %v254_v5 = vld [vmem:[%s764_s1 + $0x10] sm:$0xff]  ;;  %s345_s13 = ssub.s32 (%p642_p5), 5, %s659_s9 }
  0x15   : > { %s427_s17 = sshll.u32 %s237_s12, 3  ;;  %v253_v6 = vld [vmem:[%s764_s1 + $0x8] sm:$0xff]  ;;  %v252_v7 = vld [vmem:[%s764_s1] sm:$0xff]  ;;  %v299_v10 = vld [vmem:[%s766_s3 + $0x18] sm:$0xff]  ;;  %s703_s12 = scalar_lea.sflag [#allocation3], %s228_s6 }
  0x16   : > { %280 = vmatpush.msra.mxu0 %v258_v1  ;;  %443 = vmatpush.msra.mxu2 %v258_v1  ;;  %s239_s8 = scalar_lea.vmem %s763_s0, %s427_s17  ;;  %v298_v11 = vld [vmem:[%s766_s3 + $0x10] sm:$0xff]  ;;  %v297_v12 = vld [vmem:[%s766_s3 + $0x8] sm:$0xff]  ;;  %v296_v13 = vld [vmem:[%s766_s3] sm:$0xff]  ;;  %p346_p11 = scmp.lt.s32.totalorder (%p642_p5), %s345_s13, 2 }
  0x17   : > { %v250_v8 = vld [vmem:[%s239_s8] sm:$0xff]  ;;  %v251_v9 = vld [vmem:[%s239_s8 + $0x8] sm:$0xff]  ;;  %323 = vmatpush.msra.mxu1 %v299_v10 }
  0x18   : > { %281 = vmatpush.msra.mxu0 %v257_v2  ;;  %444 = vmatpush.msra.mxu2 %v257_v2  ;;  %v490_v14 = vld [vmem:[%s765_s2] ss:$0 sm:$0xff] }
  0x19   : > { %324 = vmatpush.msra.mxu1 %v298_v11  ;;  %v491_v21 = vld [vmem:[%s767_s4] ss:$0 sm:$0xff] }
  0x1a   : > { %282 = vmatpush.msra.mxu0 %v256_v3  ;;  %445 = vmatpush.msra.mxu2 %v256_v3 }
  0x1b   : > { %325 = vmatpush.msra.mxu1 %v297_v12 }
  0x1c   : > { %283 = vmatpush.msra.mxu0 %v255_v4  ;;  %446 = vmatpush.msra.mxu2 %v255_v4 }
  0x1d   : > { %326 = vmatpush.msra.mxu1 %v296_v13 }
  0x1e   : > { %284 = vmatpush.msra.mxu0 %v254_v5  ;;  %447 = vmatpush.msra.mxu2 %v254_v5 }
  0x20   : > { %285 = vmatpush.msra.mxu0 %v253_v6  ;;  %448 = vmatpush.msra.mxu2 %v253_v6 }
  0x22   : > { %286 = vmatpush.msra.mxu0 %v252_v7  ;;  %449 = vmatpush.msra.mxu2 %v252_v7 }
  0x23   : > { %428 = vmatmul.msk.f32.vlgmr.msra.gmra.mxu0 %vm264_vm0, %v250_v8  ;;  %429 = vmatmul.msk.f32.vlgmr.msra.gmra.mxu2 %vm264_vm0, %v251_v9 }
  0xa0   : > { %v288_v15 = vpop.f32.mrf.mxu0 }
  0xa1   : > { %v289_v16 = vadd.f32 %v490_v14, %v288_v15 }
  0xa3   : > { %492 = vtanh.f32 %v289_v16 }
  0xa6   : > { %v291_v17 = vpop.f32.mrf.mxu2 }
  0xa7   : > { %v292_v18 = vadd.f32 %v490_v14, %v291_v17 }
  0xa9   : > { %v493_v19 = vpop.eup %492  ;;  %494 = vtanh.f32 %v292_v18 }
  0xaa   : > { %430 = vmatmul.msk.f32.vlgmr.msra.gmra.mxu1 %vm304_vm1, %v493_v19 }
  0xaf   : > { %v495_v20 = vpop.eup %494 }
  0xb2   : > { %431 = vmatmul.msk.f32.gmra.mxu1 %vm304_vm1, %v495_v20 }
 0x127   : > { %v328_v22 = vpop.f32.mrf.mxu1 }
 0x128   : > { %v329_v23 = vadd.f32 %v491_v21, %v328_v22 }
 0x12a   : > { %334 = vst [vmem:[%s230_s11] sm:$0xff] %v329_v23 }
 0x12e   : > { %343 = sbr.rel (!%p642_p5) target bundleno = 338 (0x152), region = 44 }
 0x12f   : > { %v331_v24 = vpop.f32.mrf.mxu1 }
 0x130   : > { %v332_v25 = vadd.f32 %v491_v21, %v331_v24 }
 0x132   : > { %335 = vst [vmem:[%s230_s11 + $0x8] sm:$0xff] %v332_v25 }
 0x133   : > { %s777_s13 = smov (!%p346_p11, %s345_s13), 2 }
 0x134   : > { %s434_s14 = sshll.u32 %s777_s13, 3 }
 0x135   : > { %s349_s15 = ssub.s32 16, %s434_s14 }
 0x136   : > { %s350_s16 = sshll.u32 %s349_s15, 4 }
 0x137   : > { %351 = vsyncadd %s703_s12, %s350_s16  ;;  %p712_p12 = scmp.ne.s32.totalorder %s434_s14, 0  ;;  %s441_s28 = sshll.u32 %s625_s22, 4 }
 0x138   : > { %s354_s9 = scalar_lea.hbm %s768_s5, %s441_s28  ;;  %s356_s26 = sshll.u32 %s230_s11, 4  ;;  %s720_s26 = int_to_ptr.vmem [resolvable:$true] %s356_s26 }
 0x139   : > { %s358_s30 = sshll.u32 %s354_s9, 4  ;;  %s438_s6 = sshll.u32 %s777_s13, 7  ;;  %s722_s30 = int_to_ptr.hbm [resolvable:$true] %s358_s30 }
 0x13a   : > { %s496_s7 = sshra.s32 %s720_s26, 4  ;;  %s498_s8 = sshrl.u32 %s438_s6, 4  ;;  %s497_s7 = int_to_ptr.vmem [resolvable:$true] %s496_s7 }
 0x13b   : > { %s503_s10 = scalar_lea.vmem %s497_s7, %s498_s8  ;;  %s571_s22 = smov [#allocation2]  }
 0x13c   : > { %p504_p13 = scmp.ne.s32.totalorder %s497_s7, %s503_s10  ;;  %s507_s14 = scalar_lea.vmem %s571_s22, 32 }
 0x13d   : > { %p509_p2 = scmp.lt.s32.totalorder %s507_s14, %s503_s10 }
 0x13e   : > { %p505_p0 = pnand %p504_p13, %p712_p12 }
 0x140   : > { %p506_p1 = pneg %p505_p0 }
 0x142   : > { %p511_p3 = pnand %p509_p2, %p506_p1 }
 0x144   : > { %514 = shalt.err (!%p511_p3)
}
 0x145   : > { %s515_s11 = sshra.s32 %s722_s30, 4  ;;  %s526_s23 = scalar_lea.hbm %s768_s5, 40  ;;  %s516_s11 = int_to_ptr.hbm [resolvable:$true] %s515_s11 }
 0x146   : > { %s522_s15 = scalar_lea.hbm %s516_s11, %s498_s8  ;;  %p527_p8 = scmp.lt.s32.totalorder %s516_s11, %s768_s5 }
 0x147   : > { %p523_p4 = scmp.ne.s32.totalorder %s516_s11, %s522_s15  ;;  %p528_p9 = scmp.lt.s32.totalorder %s526_s23, %s522_s15 }
 0x149   : > { %p524_p5 = pnand %p523_p4, %p712_p12  ;;  %p529_p10 = por %p528_p9, %p527_p8 }
 0x14b   : > { %p525_p7 = pneg %p524_p5 }
 0x14d   : > { %p530_p11 = pnand %p529_p10, %p525_p7 }
 0x14f   : > { %533 = shalt.err (!%p530_p11)
}
 0x150   : > { %s572_s7 = smov 128   ;;  %s573_s8 = smov 8  }
 0x151   : > { %364 = dma.vmem_to_hbm [thread:$0]  (%p712_p12), %s720_s26, %s438_s6, %s722_s30, %s703_s12, %s572_s7, %s572_s7, %s573_s8  }
 0x152 PF: > { %p455_p13 = scmp.ge.s32.totalorder %s569_s21, 2  ;;  %s373_s10 = sand.u32 1, %s557_s18  }
 0x153   : > { %s374_s22 = scalar_lea.sflag [#allocation3], %s373_s10 }
 0x154   : > { %p452_p0 = pnand %p455_p13, %p646_p6 }
 0x156   : > { %p453_p1 = pneg %p452_p0 }
 0x158   : > { %552 = dma.done.wait (%p453_p1), %s374_s22, 256  }
 0x159   : > { %554 = vsyncadd (%p453_p1), %s374_s22, 4294967040  ;;  %p15_p2 = scmp.ge.s32.totalorder %s629_s24, 5   ;;  %s772_s18 = smov %s561_s19 }
 0x15a   : > { %s773_s19 = smov %s565_s20  ;;  %s774_s20 = smov %s640_s27 }
 0x15b   : > { %s775_s21 = smov %s629_s24  ;;  %17 = sbr.rel (!%p15_p2) target bundleno = 3 (0x3), region = 75 }
 0x160   :  { %380 = vsyncpa [#allocation3], 1 }
 0x161   :  { %382 = vsyncpa [#allocation3 + $0x1], 1 }

</bundles_post_ra>
